<compile_context>
chip_gen: v6e
topology: v6e:2x2x1
jax: 0.10.0
libtpu: 0.0.40
codegen_flags: <defaults>
</compile_context>

<pallas_src>
import functools
import math

import numpy as np
import jax
import jax.numpy as jnp
from jax import lax
from jax.experimental import pallas as pl
from jax.experimental.pallas import tpu as pltpu


def _sobel_filters(angle: float):
    dx = np.array([[-0.125, 0.0, 0.125],
                   [-0.25,  0.0, 0.25],
                   [-0.125, 0.0, 0.125]], dtype=np.float64)
    dy = dx.T
    c, s = math.cos(angle), math.sin(angle)
    return c * dx - s * dy, s * dx + c * dy


# --------------------------------- kernel ---------------------------------
def _ca_kernel(x_ref, rand_ref, w1_ref, b1_ref, w2_ref, b2_ref, out_ref,
               *, H, W, C, HID, cos_a, sin_a, step_size, fire_rate):
    HW = H * W
    xv = x_ref[0]                                     # (C, HW) f32, channel-major

    # lane column index (j = flat % W) for the W-direction torus fix-up
    col = lax.broadcasted_iota(jnp.int32, (1, HW), 1) % W
    first_col = col == 0
    last_col = col == (W - 1)

    def roll_flat(a, k):
        # result[..., p] = a[..., (p - k) % HW]   (XLU lane rotate)
        return pltpu.roll(a, shift=k % HW, axis=1)

    def up(a):      # sample (i-1, j): flat wrap == torus wrap in H
        return roll_flat(a, W)

    def down(a):    # sample (i+1, j)
        return roll_flat(a, -W)

    def left(a):    # sample (i, (j-1) % W): fix the j==0 column
        return jnp.where(first_col, roll_flat(a, -(W - 1)), roll_flat(a, 1))

    def right(a):   # sample (i, (j+1) % W): fix the j==W-1 column
        return jnp.where(last_col, roll_flat(a, W - 1), roll_flat(a, -1))

    # ---- perception: separable circular 3x3 Sobel (cross-correlation) ----
    xl, xr = left(xv), right(xv)
    g = xr - xl                                       # horizontal gradient  [-1,0,1]
    s = 0.25 * xv + 0.125 * (xl + xr)                 # horizontal smooth [.125,.25,.125]
    pdx = 0.25 * g + 0.125 * (up(g) + down(g))        # vertical smooth of gradient
    pdy = down(s) - up(s)                             # vertical gradient of smooth
    if sin_a != 0.0:                                  # rotated Sobel (compile-time)
        pdx, pdy = (cos_a * pdx - sin_a * pdy, sin_a * pdx + cos_a * pdy)
    elif cos_a != 1.0:
        pdx, pdy = cos_a * pdx, cos_a * pdy

    # sublane concat (cheap, no lane relayout): rows [id | dx | dy], each C rows
    perc = jnp.concatenate([xv, pdx, pdy], axis=0).astype(jnp.bfloat16)   # (3C, HW)

    # ---- per-pixel 1x1-conv MLP on the MXU (bf16 inputs, f32 accumulate) ----
    h = jnp.dot(w1_ref[...], perc, preferred_element_type=jnp.float32)    # (HID, HW)
    h = jnp.maximum(h + b1_ref[...], 0.0)
    y = jnp.dot(w2_ref[...], h.astype(jnp.bfloat16),
                preferred_element_type=jnp.float32) + b2_ref[...]         # (C, HW)

    # ---- stochastic update mask ----
    upd = (rand_ref[0] < fire_rate).astype(jnp.float32)                   # (1, HW)
    dxv = y * step_size * upd

    # ---- living masks: separable circular 3x3 max-pool of alpha > 0.1 ----
    def alive(state):
        alpha = state[3:4, :]                                             # (1, HW)
        rowm = jnp.maximum(alpha, jnp.maximum(left(alpha), right(alpha)))
        pooled = jnp.maximum(rowm, jnp.maximum(up(rowm), down(rowm)))
        return pooled > 0.1

    pre_life = alive(xv)
    xn = xv + dxv
    post_life = alive(xn)
    life = jnp.logical_and(pre_life, post_life).astype(jnp.float32)       # (1, HW)
    out_ref[0] = xn * life


# --------------------------------- wrapper ---------------------------------
def prepare_params(w1_t, b1, w2_t, b2):
    """One-time (outside the hot loop) repack of the PyTorch Conv2d weights.

    PyTorch's perception channel order is interleaved [c0_id, c0_dx, c0_dy, c1_id, ...];
    the kernel's perc rows are filter-major [id(all C), dx(all C), dy(all C)], so permute
    W1's input columns accordingly.  Weights are cast to bf16 for the MXU.
    """
    HID, threeC = w1_t.shape
    C = threeC // 3
    w1_cm = jnp.transpose(w1_t.reshape(HID, C, 3), (0, 2, 1)).reshape(HID, 3 * C)
    return (w1_cm.astype(jnp.bfloat16),
            b1.reshape(HID, 1).astype(jnp.float32),
            w2_t.astype(jnp.bfloat16),
            b2.reshape(C, 1).astype(jnp.float32))


def ca_forward_pallas(x_nchw, rand_u_nchw, w1_cm, b1_c, w2_cm, b2_c,
                      *, angle=0.0, step_size=1.0, fire_rate=0.5):
    """One CA update step. x_nchw: (B, C, H, W) f32. Returns (B, C, H, W) f32."""
    B, C, H, W = x_nchw.shape
    HW = H * W
    HID = w1_cm.shape[0]

    # NCHW -> channel-major flat spatial: a free reshape, no HBM transpose.
    x = x_nchw.reshape(B, C, HW).astype(jnp.float32)
    rand_u = rand_u_nchw.reshape(B, 1, HW).astype(jnp.float32)

    kernel = functools.partial(
        _ca_kernel, H=H, W=W, C=C, HID=HID,
        cos_a=math.cos(angle), sin_a=math.sin(angle),
        step_size=float(step_size), fire_rate=float(fire_rate))

    out = pl.pallas_call(
        kernel,
        out_shape=jax.ShapeDtypeStruct((B, C, HW), jnp.float32),
        grid_spec=pltpu.PrefetchScalarGridSpec(
            num_scalar_prefetch=0,
            grid=(B,),
            in_specs=[
                pl.BlockSpec((1, C, HW), lambda b: (b, 0, 0)),   # state tile (lane-dense)
                pl.BlockSpec((1, 1, HW), lambda b: (b, 0, 0)),   # random field
                pl.BlockSpec((HID, 3 * C), lambda b: (0, 0)),    # W1 (bf16)
                pl.BlockSpec((HID, 1), lambda b: (0, 0)),        # b1
                pl.BlockSpec((C, HID), lambda b: (0, 0)),        # W2 (bf16)
                pl.BlockSpec((C, 1), lambda b: (0, 0)),          # b2
            ],
            out_specs=pl.BlockSpec((1, C, HW), lambda b: (b, 0, 0)),
        ),
        compiler_params=pltpu.CompilerParams(
            dimension_semantics=("parallel",)),   # batch axis -> both TCs on v7x
    )(x, rand_u, w1_cm, b1_c, w2_cm, b2_c)

    return out.reshape(B, C, H, W)


# ------------------- pure-JAX reference (for a sanity check) -------------------
def ca_forward_reference(x, w1_t, b1, w2_t, b2, rand_u,
                         *, angle=0.0, step_size=1.0, fire_rate=0.5):
    B, C, H, W = x.shape
    HID = w1_t.shape[0]

    def wrap(img):
        return jnp.pad(img, ((0, 0), (0, 0), (1, 1), (1, 1)), mode='wrap')

    def living(img):
        alpha = wrap(img[:, 3:4])
        m = lax.reduce_window(alpha, -jnp.inf, lax.max, (1, 1, 3, 3),
                              (1, 1, 1, 1), 'VALID')
        return m > 0.1

    kdx, kdy = _sobel_filters(angle)
    ident = np.zeros((3, 3)); ident[1, 1] = 1.0
    filt = np.tile(np.stack([ident, kdx, kdy]), (C, 1, 1))[:, None]   # (3C,1,3,3)
    perc = lax.conv_general_dilated(
        wrap(x), jnp.asarray(filt, jnp.float32), (1, 1), 'VALID',
        dimension_numbers=('NCHW', 'OIHW', 'NCHW'), feature_group_count=C)

    h = lax.conv_general_dilated(
        perc, w1_t.reshape(HID, 3 * C, 1, 1), (1, 1), 'VALID',
        dimension_numbers=('NCHW', 'OIHW', 'NCHW')) + b1.reshape(1, HID, 1, 1)
    h = jnp.maximum(h, 0.0)
    y = lax.conv_general_dilated(
        h, w2_t.reshape(C, HID, 1, 1), (1, 1), 'VALID',
        dimension_numbers=('NCHW', 'OIHW', 'NCHW')) + b2.reshape(1, C, 1, 1)

    dxv = y * step_size * (rand_u < fire_rate).astype(jnp.float32)
    pre = living(x)
    xn = x + dxv
    post = living(xn)
    return xn * jnp.logical_and(pre, post).astype(jnp.float32)


if __name__ == "__main__":
    B, C, H, W, HID = 2, 16, 16, 16, 128
    fire_rate, angle, step_size = 0.5, 0.0, 1.0

    key = jax.random.PRNGKey(0)
    kx, kr, k1w, k1b, k2w, k2b = jax.random.split(key, 6)

    # deterministic synthetic parameters (PyTorch Conv2d-style uniform init)
    k1 = 1.0 / math.sqrt(3 * C)
    k2 = 1.0 / math.sqrt(HID)
    w1_t = jax.random.uniform(k1w, (HID, 3 * C), jnp.float32, -k1, k1)  # Conv2d(3C,128,1) weight
    b1 = jax.random.uniform(k1b, (HID,), jnp.float32, -k1, k1)
    w2_t = jax.random.uniform(k2w, (C, HID), jnp.float32, -k2, k2)      # Conv2d(128,C,1) weight
    b2 = jax.random.uniform(k2b, (C,), jnp.float32, -k2, k2)

    # CA state and the stochastic-update random field (torch.rand equivalent)
    x = jax.random.uniform(kx, (B, C, H, W), jnp.float32)
    rand_u = jax.random.uniform(kr, (B, 1, H, W), jnp.float32)

    # one-time weight repack (hoisted out of the per-step hot path)
    params = prepare_params(w1_t, b1, w2_t, b2)

    fwd = jax.jit(functools.partial(ca_forward_pallas,
                                    angle=angle, step_size=step_size, fire_rate=fire_rate))
    out = fwd(x, rand_u, *params)
    out = jax.block_until_ready(out)

    ref = ca_forward_reference(x, w1_t, b1, w2_t, b2, rand_u,
                               angle=angle, step_size=step_size, fire_rate=fire_rate)
    np.testing.assert_allclose(np.asarray(out), np.asarray(ref), rtol=1e-2, atol=1e-2)

    print("KERNEL_OK")
</pallas_src>

<mosaic_0001>
module attributes {stable_mosaic.version = 11 : i64} {
  func.func @_ca_kernel(%arg0: i32, %arg1: memref<1x16x256xf32, #tpu.memory_space<vmem>>, %arg2: memref<1x1x256xf32, #tpu.memory_space<vmem>>, %arg3: memref<128x48xbf16, #tpu.memory_space<vmem>>, %arg4: memref<128x1xf32, #tpu.memory_space<vmem>>, %arg5: memref<16x128xbf16, #tpu.memory_space<vmem>>, %arg6: memref<16x1xf32, #tpu.memory_space<vmem>>, %arg7: memref<1x16x256xf32, #tpu.memory_space<vmem>>) attributes {dimension_semantics = [#tpu.dimension_semantics<parallel>], iteration_bounds = array<i64: 2>, scalar_prefetch = 0 : i64, scratch_operands = 0 : i64, tpu.core_type = #tpu.core_type<tc>, window_params = [{transform_indices = @transform_0, window_bounds = array<i64: 1, 16, 256>}, {transform_indices = @transform_1, window_bounds = array<i64: 1, 1, 256>}, {pipeline_mode = #tpu.pipeline_mode<synchronous>, transform_indices = @transform_2, window_bounds = array<i64: 128, 48>}, {pipeline_mode = #tpu.pipeline_mode<synchronous>, transform_indices = @transform_3, window_bounds = array<i64: 128, 1>}, {pipeline_mode = #tpu.pipeline_mode<synchronous>, transform_indices = @transform_4, window_bounds = array<i64: 16, 128>}, {pipeline_mode = #tpu.pipeline_mode<synchronous>, transform_indices = @transform_5, window_bounds = array<i64: 16, 1>}, {transform_indices = @transform_6, window_bounds = array<i64: 1, 16, 256>}]} {
    %c0 = arith.constant 0 : index
    %c0_0 = arith.constant 0 : index
    %c0_1 = arith.constant 0 : index
    %0 = vector.load %arg1[%c0, %c0_0, %c0_1] : memref<1x16x256xf32, #tpu.memory_space<vmem>>, vector<1x16x256xf32>
    %1 = vector.shape_cast %0 : vector<1x16x256xf32> to vector<16x256xf32>
    %2 = tpu.iota {dimensions = array<i32: 1>} : vector<1x256xi32>
    %c16_i32 = arith.constant 16 : i32
    %c0_i32 = arith.constant 0 : i32
    %3 = arith.cmpi eq, %c16_i32, %c0_i32 : i32
    %c1_i32 = arith.constant 1 : i32
    %4 = arith.select %3, %c1_i32, %c16_i32 : i32
    %5 = vector.broadcast %4 : i32 to vector<1x256xi32>
    %6 = arith.remsi %2, %5 : vector<1x256xi32>
    %c0_i32_2 = arith.constant 0 : i32
    %7 = vector.broadcast %c0_i32_2 : i32 to vector<1x256xi32>
    %8 = arith.cmpi ne, %6, %7 : vector<1x256xi32>
    %c0_i32_3 = arith.constant 0 : i32
    %9 = vector.broadcast %c0_i32_3 : i32 to vector<1x256xi32>
    %10 = arith.cmpi slt, %6, %9 : vector<1x256xi32>
    %c0_i32_4 = arith.constant 0 : i32
    %11 = arith.cmpi slt, %4, %c0_i32_4 : i32
    %12 = vector.broadcast %11 : i1 to vector<1x256xi1>
    %13 = vector.broadcast %12 : vector<1x256xi1> to vector<1x256xi1>
    %14 = arith.xori %10, %13 : vector<1x256xi1>
    %15 = arith.andi %14, %8 : vector<1x256xi1>
    %16 = vector.broadcast %4 : i32 to vector<1x256xi32>
    %17 = arith.addi %6, %16 : vector<1x256xi32>
    %18 = arith.select %15, %17, %6 : vector<1x256xi1>, vector<1x256xi32>
    %c0_i32_5 = arith.constant 0 : i32
    %19 = vector.broadcast %c0_i32_5 : i32 to vector<1x256xi32>
    %20 = arith.cmpi eq, %18, %19 : vector<1x256xi32>
    %c15_i32 = arith.constant 15 : i32
    %21 = vector.broadcast %c15_i32 : i32 to vector<1x256xi32>
    %22 = arith.cmpi eq, %18, %21 : vector<1x256xi32>
    %c241_i32 = arith.constant 241 : i32
    %23 = tpu.dynamic_rotate %1 by %c241_i32 dim 1 : vector<16x256xf32>, i32 -> vector<16x256xf32>
    %c1_i32_6 = arith.constant 1 : i32
    %24 = tpu.dynamic_rotate %1 by %c1_i32_6 dim 1 : vector<16x256xf32>, i32 -> vector<16x256xf32>
    %25 = vector.shape_cast %20 : vector<1x256xi1> to vector<1x256xi1>
    %26 = vector.broadcast %25 : vector<1x256xi1> to vector<16x256xi1>
    %27 = arith.select %26, %23, %24 : vector<16x256xi1>, vector<16x256xf32>
    %c15_i32_7 = arith.constant 15 : i32
    %28 = tpu.dynamic_rotate %1 by %c15_i32_7 dim 1 : vector<16x256xf32>, i32 -> vector<16x256xf32>
    %c255_i32 = arith.constant 255 : i32
    %29 = tpu.dynamic_rotate %1 by %c255_i32 dim 1 : vector<16x256xf32>, i32 -> vector<16x256xf32>
    %30 = vector.shape_cast %22 : vector<1x256xi1> to vector<1x256xi1>
    %31 = vector.broadcast %30 : vector<1x256xi1> to vector<16x256xi1>
    %32 = arith.select %31, %28, %29 : vector<16x256xi1>, vector<16x256xf32>
    %33 = arith.subf %32, %27 : vector<16x256xf32>
    %cst = arith.constant 2.500000e-01 : f32
    %34 = vector.broadcast %cst : f32 to vector<16x256xf32>
    %35 = arith.mulf %34, %1 : vector<16x256xf32>
    %36 = arith.addf %27, %32 : vector<16x256xf32>
    %cst_8 = arith.constant 1.250000e-01 : f32
    %37 = vector.broadcast %cst_8 : f32 to vector<16x256xf32>
    %38 = arith.mulf %37, %36 : vector<16x256xf32>
    %39 = arith.addf %35, %38 : vector<16x256xf32>
    %cst_9 = arith.constant 2.500000e-01 : f32
    %40 = vector.broadcast %cst_9 : f32 to vector<16x256xf32>
    %41 = arith.mulf %40, %33 : vector<16x256xf32>
    %c16_i32_10 = arith.constant 16 : i32
    %42 = tpu.dynamic_rotate %33 by %c16_i32_10 dim 1 : vector<16x256xf32>, i32 -> vector<16x256xf32>
    %c240_i32 = arith.constant 240 : i32
    %43 = tpu.dynamic_rotate %33 by %c240_i32 dim 1 : vector<16x256xf32>, i32 -> vector<16x256xf32>
    %44 = arith.addf %42, %43 : vector<16x256xf32>
    %cst_11 = arith.constant 1.250000e-01 : f32
    %45 = vector.broadcast %cst_11 : f32 to vector<16x256xf32>
    %46 = arith.mulf %45, %44 : vector<16x256xf32>
    %47 = arith.addf %41, %46 : vector<16x256xf32>
    %c240_i32_12 = arith.constant 240 : i32
    %48 = tpu.dynamic_rotate %39 by %c240_i32_12 dim 1 : vector<16x256xf32>, i32 -> vector<16x256xf32>
    %c16_i32_13 = arith.constant 16 : i32
    %49 = tpu.dynamic_rotate %39 by %c16_i32_13 dim 1 : vector<16x256xf32>, i32 -> vector<16x256xf32>
    %50 = arith.subf %48, %49 : vector<16x256xf32>
    %51 = tpu.concatenate %1, %47, %50 in 0 : vector<16x256xf32>, vector<16x256xf32>, vector<16x256xf32> -> vector<48x256xf32>
    %52 = arith.truncf %51 : vector<48x256xf32> to vector<48x256xbf16>
    %c0_14 = arith.constant 0 : index
    %c0_15 = arith.constant 0 : index
    %53 = vector.load %arg3[%c0_14, %c0_15] : memref<128x48xbf16, #tpu.memory_space<vmem>>, vector<128x48xbf16>
    %cst_16 = arith.constant dense<0.000000e+00> : vector<128x256xf32>
    %54 = tpu.matmul %53, %52, %cst_16 {dimension_numbers = #tpu.dot_dimension_numbers<[1], [0], [0], [1], [0, 0, 1, 1], [], []>} : vector<128x48xbf16>, vector<48x256xbf16>, vector<128x256xf32> -> vector<128x256xf32>
    %c0_17 = arith.constant 0 : index
    %c0_18 = arith.constant 0 : index
    %55 = vector.load %arg4[%c0_17, %c0_18] : memref<128x1xf32, #tpu.memory_space<vmem>>, vector<128x1xf32>
    %56 = vector.broadcast %55 : vector<128x1xf32> to vector<128x256xf32>
    %57 = arith.addf %54, %56 : vector<128x256xf32>
    %cst_19 = arith.constant 0.000000e+00 : f32
    %58 = vector.broadcast %cst_19 : f32 to vector<128x256xf32>
    %59 = arith.maximumf %57, %58 : vector<128x256xf32>
    %c0_20 = arith.constant 0 : index
    %c0_21 = arith.constant 0 : index
    %60 = vector.load %arg5[%c0_20, %c0_21] : memref<16x128xbf16, #tpu.memory_space<vmem>>, vector<16x128xbf16>
    %61 = arith.truncf %59 : vector<128x256xf32> to vector<128x256xbf16>
    %cst_22 = arith.constant dense<0.000000e+00> : vector<16x256xf32>
    %62 = tpu.matmul %60, %61, %cst_22 {dimension_numbers = #tpu.dot_dimension_numbers<[1], [0], [0], [1], [0, 0, 1, 1], [], []>} : vector<16x128xbf16>, vector<128x256xbf16>, vector<16x256xf32> -> vector<16x256xf32>
    %c0_23 = arith.constant 0 : index
    %c0_24 = arith.constant 0 : index
    %63 = vector.load %arg6[%c0_23, %c0_24] : memref<16x1xf32, #tpu.memory_space<vmem>>, vector<16x1xf32>
    %64 = vector.broadcast %63 : vector<16x1xf32> to vector<16x256xf32>
    %65 = arith.addf %62, %64 : vector<16x256xf32>
    %c0_25 = arith.constant 0 : index
    %c0_26 = arith.constant 0 : index
    %c0_27 = arith.constant 0 : index
    %66 = vector.load %arg2[%c0_25, %c0_26, %c0_27] : memref<1x1x256xf32, #tpu.memory_space<vmem>>, vector<1x1x256xf32>
    %67 = vector.shape_cast %66 : vector<1x1x256xf32> to vector<1x256xf32>
    %cst_28 = arith.constant 5.000000e-01 : f32
    %68 = vector.broadcast %cst_28 : f32 to vector<1x256xf32>
    %69 = arith.cmpf olt, %67, %68 : vector<1x256xf32>
    %70 = arith.extui %69 : vector<1x256xi1> to vector<1x256xi32>
    %71 = arith.sitofp %70 : vector<1x256xi32> to vector<1x256xf32>
    %cst_29 = arith.constant 1.000000e+00 : f32
    %72 = vector.broadcast %cst_29 : f32 to vector<16x256xf32>
    %73 = arith.mulf %65, %72 : vector<16x256xf32>
    %74 = vector.broadcast %71 : vector<1x256xf32> to vector<16x256xf32>
    %75 = arith.mulf %73, %74 : vector<16x256xf32>
    %76 = vector.extract_strided_slice %1 {offsets = [3, 0], sizes = [1, 256], strides = [1, 1]} : vector<16x256xf32> to vector<1x256xf32>
    %c241_i32_30 = arith.constant 241 : i32
    %77 = tpu.dynamic_rotate %76 by %c241_i32_30 dim 1 : vector<1x256xf32>, i32 -> vector<1x256xf32>
    %c1_i32_31 = arith.constant 1 : i32
    %78 = tpu.dynamic_rotate %76 by %c1_i32_31 dim 1 : vector<1x256xf32>, i32 -> vector<1x256xf32>
    %79 = arith.select %20, %77, %78 : vector<1x256xi1>, vector<1x256xf32>
    %c15_i32_32 = arith.constant 15 : i32
    %80 = tpu.dynamic_rotate %76 by %c15_i32_32 dim 1 : vector<1x256xf32>, i32 -> vector<1x256xf32>
    %c255_i32_33 = arith.constant 255 : i32
    %81 = tpu.dynamic_rotate %76 by %c255_i32_33 dim 1 : vector<1x256xf32>, i32 -> vector<1x256xf32>
    %82 = arith.select %22, %80, %81 : vector<1x256xi1>, vector<1x256xf32>
    %83 = arith.maximumf %79, %82 : vector<1x256xf32>
    %84 = arith.maximumf %76, %83 : vector<1x256xf32>
    %c16_i32_34 = arith.constant 16 : i32
    %85 = tpu.dynamic_rotate %84 by %c16_i32_34 dim 1 : vector<1x256xf32>, i32 -> vector<1x256xf32>
    %c240_i32_35 = arith.constant 240 : i32
    %86 = tpu.dynamic_rotate %84 by %c240_i32_35 dim 1 : vector<1x256xf32>, i32 -> vector<1x256xf32>
    %87 = arith.maximumf %85, %86 : vector<1x256xf32>
    %88 = arith.maximumf %84, %87 : vector<1x256xf32>
    %cst_36 = arith.constant 1.000000e-01 : f32
    %89 = vector.broadcast %cst_36 : f32 to vector<1x256xf32>
    %90 = arith.cmpf ogt, %88, %89 : vector<1x256xf32>
    %91 = arith.addf %1, %75 : vector<16x256xf32>
    %92 = vector.extract_strided_slice %91 {offsets = [3, 0], sizes = [1, 256], strides = [1, 1]} : vector<16x256xf32> to vector<1x256xf32>
    %c241_i32_37 = arith.constant 241 : i32
    %93 = tpu.dynamic_rotate %92 by %c241_i32_37 dim 1 : vector<1x256xf32>, i32 -> vector<1x256xf32>
    %c1_i32_38 = arith.constant 1 : i32
    %94 = tpu.dynamic_rotate %92 by %c1_i32_38 dim 1 : vector<1x256xf32>, i32 -> vector<1x256xf32>
    %95 = arith.select %20, %93, %94 : vector<1x256xi1>, vector<1x256xf32>
    %c15_i32_39 = arith.constant 15 : i32
    %96 = tpu.dynamic_rotate %92 by %c15_i32_39 dim 1 : vector<1x256xf32>, i32 -> vector<1x256xf32>
    %c255_i32_40 = arith.constant 255 : i32
    %97 = tpu.dynamic_rotate %92 by %c255_i32_40 dim 1 : vector<1x256xf32>, i32 -> vector<1x256xf32>
    %98 = arith.select %22, %96, %97 : vector<1x256xi1>, vector<1x256xf32>
    %99 = arith.maximumf %95, %98 : vector<1x256xf32>
    %100 = arith.maximumf %92, %99 : vector<1x256xf32>
    %c16_i32_41 = arith.constant 16 : i32
    %101 = tpu.dynamic_rotate %100 by %c16_i32_41 dim 1 : vector<1x256xf32>, i32 -> vector<1x256xf32>
    %c240_i32_42 = arith.constant 240 : i32
    %102 = tpu.dynamic_rotate %100 by %c240_i32_42 dim 1 : vector<1x256xf32>, i32 -> vector<1x256xf32>
    %103 = arith.maximumf %101, %102 : vector<1x256xf32>
    %104 = arith.maximumf %100, %103 : vector<1x256xf32>
    %cst_43 = arith.constant 1.000000e-01 : f32
    %105 = vector.broadcast %cst_43 : f32 to vector<1x256xf32>
    %106 = arith.cmpf ogt, %104, %105 : vector<1x256xf32>
    %107 = arith.andi %90, %106 : vector<1x256xi1>
    %108 = arith.extui %107 : vector<1x256xi1> to vector<1x256xi32>
    %109 = arith.sitofp %108 : vector<1x256xi32> to vector<1x256xf32>
    %110 = vector.broadcast %109 : vector<1x256xf32> to vector<16x256xf32>
    %111 = arith.mulf %91, %110 : vector<16x256xf32>
    %c0_44 = arith.constant 0 : index
    %c0_45 = arith.constant 0 : index
    %c0_46 = arith.constant 0 : index
    %112 = vector.load %arg7[%c0_44, %c0_45, %c0_46] : memref<1x16x256xf32, #tpu.memory_space<vmem>>, vector<1x16x256xf32>
    %113 = vector.shape_cast %112 : vector<1x16x256xf32> to vector<16x256xf32>
    %114 = vector.shape_cast %111 : vector<16x256xf32> to vector<1x16x256xf32>
    tpu.vector_store %arg7[%c0_44, %c0_45, %c0_46], %114 {strides = array<i32>} : memref<1x16x256xf32, #tpu.memory_space<vmem>>, vector<1x16x256xf32>,
    return
  }
  func.func @transform_0(%arg0: i32) -> (i32, i32, i32) {
    %c0_i32 = arith.constant 0 : i32
    %c0_i32_0 = arith.constant 0 : i32
    %c0_i32_1 = arith.constant 0 : i32
    return %arg0, %c0_i32, %c0_i32_0 : i32, i32, i32
  }
  func.func @transform_1(%arg0: i32) -> (i32, i32, i32) {
    %c0_i32 = arith.constant 0 : i32
    %c0_i32_0 = arith.constant 0 : i32
    %c0_i32_1 = arith.constant 0 : i32
    return %arg0, %c0_i32, %c0_i32_0 : i32, i32, i32
  }
  func.func @transform_2(%arg0: i32) -> (i32, i32) {
    %c0_i32 = arith.constant 0 : i32
    %c0_i32_0 = arith.constant 0 : i32
    %c0_i32_1 = arith.constant 0 : i32
    return %c0_i32, %c0_i32_0 : i32, i32
  }
  func.func @transform_3(%arg0: i32) -> (i32, i32) {
    %c0_i32 = arith.constant 0 : i32
    %c0_i32_0 = arith.constant 0 : i32
    %c0_i32_1 = arith.constant 0 : i32
    return %c0_i32, %c0_i32_0 : i32, i32
  }
  func.func @transform_4(%arg0: i32) -> (i32, i32) {
    %c0_i32 = arith.constant 0 : i32
    %c0_i32_0 = arith.constant 0 : i32
    %c0_i32_1 = arith.constant 0 : i32
    return %c0_i32, %c0_i32_0 : i32, i32
  }
  func.func @transform_5(%arg0: i32) -> (i32, i32) {
    %c0_i32 = arith.constant 0 : i32
    %c0_i32_0 = arith.constant 0 : i32
    %c0_i32_1 = arith.constant 0 : i32
    return %c0_i32, %c0_i32_0 : i32, i32
  }
  func.func @transform_6(%arg0: i32) -> (i32, i32, i32) {
    %c0_i32 = arith.constant 0 : i32
    %c0_i32_0 = arith.constant 0 : i32
    %c0_i32_1 = arith.constant 0 : i32
    return %arg0, %c0_i32, %c0_i32_0 : i32, i32, i32
  }
}

</mosaic_0001>

<bundles_post_ra>
// kernel: ca_forward_pallas.1
= control target key start
LH: loop header
LB: loop body
LE: loop exit
PB: predicated region body
PF: predicated region fallthrough
CT: control target
= control target key end

     0   :  { %s1244_s21 = smov 0   ;;  %s1775_s0 = inlined_call_operand.vmem [shape: f32[2,16,256], index: 0, kind: input, shape index: {}]   ;;  %s1776_s1 = inlined_call_operand.vmem [shape: f32[2,1,256], index: 1, kind: input, shape index: {}]   ;;  %s1777_s2 = inlined_call_operand.vmem [shape: bf16[128,48], index: 2, kind: input, shape index: {}]   ;;  %s1778_s3 = inlined_call_operand.vmem [shape: f32[128,1], index: 3, kind: input, shape index: {}]   ;;  %s1779_s4 = inlined_call_operand.vmem [shape: bf16[16,128], index: 4, kind: input, shape index: {}]   ;;  %s1780_s5 = inlined_call_operand.vmem [shape: f32[16,1], index: 5, kind: input, shape index: {}]   ;;  %s1781_s6 = inlined_call_operand.vmem [shape: f32[2,16,256], index: 6, kind: output, shape index: {}]  }
   0x1 LB: > { %s1130_s22 = sadd.s32 4294967295, %s1199_s21   ;;  %p1134_p0 = scmp.ge.s32.totalorder %s1199_s21, 1  ;;  %s1199_s21 = sphi %s1244_s21, %s16_s21  }
   0x2   : > { %p221_p1 = scmp.lt.s32.totalorder %s1199_s21, 3 }
   0x4   : > { %p222_p2 = pnand %p1134_p0, %p221_p1 }
   0x5   : > { %p255_p3 = scmp.lt.s32.totalorder (!%p222_p2), %s1130_s22, 1  ;;  %s1201_s27 = smov (!%p222_p2), 113  }
   0x6   : > { %225 = sbr.rel (%p222_p2) target bundleno = 1096 (0x448), region = 44  ;;  %s1202_s28 = smov (!%p222_p2), 1  }
   0x7   : > { %s1203_s29 = smov (!%p222_p2), 15   ;;  %s1204_s30 = smov (!%p222_p2), 127  }
   0x8   : > { %s1205_s7 = smov (!%p222_p2), 16   ;;  %s1206_s8 = smov (!%p222_p2), 112  }
   0xb   : > { %s1791_s22 = smov (!%p255_p3, %s1130_s22), 1  ;;  %v274_v12 = vlaneseq  ;;  %vm621_vm10 = vcmask 392192   ;;  %v810_v24 = vld [vmem:[%s1780_s5 + $0x8] sm:$0xff] }
   0xc   : > { %s1162_s23 = sshll.u32 %s1791_s22, 5  ;;  %s1137_s19 = sshll.u32 %s1791_s22, 1 }
   0xd   : > { %s1260_s26 = scalar_lea.vmem %s1775_s0, %s1162_s23  ;;  %v1307_v15 = vand.u32 127, %v274_v12  ;;  %s263_s25 = scalar_lea.vmem %s1776_s1, %s1137_s19 }
   0xe   : > { %v1263_v0 = vld [vmem:[%s1260_s26 + $0x8] sm:$0xff]  ;;  %v1266_v1 = vld [vmem:[%s1260_s26] sm:$0xff]  ;;  %v1273_v2 = vld [vmem:[%s1260_s26 + $0x18] sm:$0xff] }
   0xf   : > { %309 = vrot.lane.b32.xlu1 %v1263_v0, %s1201_s27  ;;  %305 = vrot.lane.b32.xlu0 %v1266_v1, %s1201_s27  ;;  %v1276_v3 = vld [vmem:[%s1260_s26 + $0x10] sm:$0xff]  ;;  %v276_v16 = vadd.s32 128, %v1307_v15  ;;  %v281_v19 = vand.u32 15, %v1307_v15  ;;  %vm313_vm0 = vcmp.lt.s32.totalorder %v1307_v15, 113  ;;  %vm326_vm1 = vcmp.lt.s32.totalorder %v1307_v15, 1 }
  0x10   : > { %vm347_vm2 = vcmp.lt.s32.totalorder %v1307_v15, 15  ;;  %vm360_vm3 = vcmp.lt.s32.totalorder %v1307_v15, 127  ;;  %v379_v59 = vmul.f32 0.25, %v1276_v3  ;;  %v377_v60 = vmul.f32 0.25, %v1266_v1 }
  0x11   : > { %v288_v20 = vand.u32 15, %v276_v16  ;;  %vm1315_vm4 = vcmp.eq.s32.totalorder %v281_v19, 0  ;;  %vm1323_vm6 = vcmp.eq.s32.totalorder %v281_v19, 15  ;;  %v500_v16 = vld [vmem:[%s1778_s3 + $0x78] sm:$0xff]  ;;  %v495_v19 = vld [vmem:[%s1778_s3 + $0x50] sm:$0xff]  ;;  %vm405_vm8 = vcmp.lt.s32.totalorder %v1307_v15, 16 }
  0x12   : > { %vm418_vm9 = vcmp.lt.s32.totalorder %v1307_v15, 112 }
  0x13   : > { %311 = vrot.lane.b32.xlu1 %v1273_v2, %s1201_s27  ;;  %307 = vrot.lane.b32.xlu0 %v1276_v3, %s1201_s27  ;;  %vm1319_vm5 = vcmp.eq.s32.totalorder %v288_v20, 0  ;;  %vm1327_vm7 = vcmp.eq.s32.totalorder %v288_v20, 15  ;;  %v498_v20 = vld [vmem:[%s1778_s3 + $0x68] sm:$0xff] }
  0x17   : > { %320 = vrot.lane.b32.xlu1 %v1276_v3, %s1202_s28  ;;  %318 = vrot.lane.b32.xlu0 %v1266_v1, %s1202_s28 }
  0x1b   : > { %324 = vrot.lane.b32.xlu1 %v1273_v2, %s1202_s28  ;;  %322 = vrot.lane.b32.xlu0 %v1263_v0, %s1202_s28 }
  0x1f   : > { %341 = vrot.lane.b32.xlu1 %v1276_v3, %s1203_s29  ;;  %339 = vrot.lane.b32.xlu0 %v1266_v1, %s1203_s29 }
  0x23   : > { %345 = vrot.lane.b32.xlu1 %v1273_v2, %s1203_s29  ;;  %343 = vrot.lane.b32.xlu0 %v1263_v0, %s1203_s29 }
  0x27   : > { %354 = vrot.lane.b32.xlu1 %v1276_v3, %s1204_s30  ;;  %352 = vrot.lane.b32.xlu0 %v1266_v1, %s1204_s30 }
  0x2b   : > { %358 = vrot.lane.b32.xlu1 %v1273_v2, %s1204_s30  ;;  %356 = vrot.lane.b32.xlu0 %v1263_v0, %s1204_s30 }
  0x81   : > { %v310_v4 = vpop.permute.xlu1 %309  ;;  %v306_v5 = vpop.permute.xlu0 %305 }
  0x82   : > { %v314_v27 = vsel %vm313_vm0, %v306_v5, %v310_v4  ;;  %v316_v51 = vsel %vm313_vm0, %v310_v4, %v306_v5  ;;  %v380_v5 = vmul.f32 0.25, %v1273_v2 }
  0x85   : > { %v312_v6 = vpop.permute.xlu1 %311  ;;  %v308_v7 = vpop.permute.xlu0 %307 }
  0x86   : > { %v315_v28 = vsel %vm313_vm0, %v308_v7, %v312_v6  ;;  %v317_v52 = vsel %vm313_vm0, %v312_v6, %v308_v7  ;;  %v378_v6 = vmul.f32 0.25, %v1263_v0 }
  0x89   : > { %v321_v8 = vpop.permute.xlu1 %320  ;;  %v319_v9 = vpop.permute.xlu0 %318 }
  0x8d   : > { %v325_v10 = vpop.permute.xlu1 %324  ;;  %v323_v11 = vpop.permute.xlu0 %322 }
  0x8e   : > { %v330_v29 = vsel %vm326_vm1, %v325_v10, %v321_v8  ;;  %v329_v30 = vsel %vm326_vm1, %v323_v11, %v319_v9  ;;  %v328_v41 = vsel %vm326_vm1, %v321_v8, %v325_v10  ;;  %v327_v43 = vsel %vm326_vm1, %v319_v9, %v323_v11 }
  0x8f   : > { %v337_v42 = vsel %vm1315_vm4, %v315_v28, %v330_v29  ;;  %v335_v44 = vsel %vm1315_vm4, %v314_v27, %v329_v30  ;;  %v338_v53 = vsel %vm1319_vm5, %v317_v52, %v328_v41  ;;  %v336_v54 = vsel %vm1319_vm5, %v316_v51, %v327_v43  ;;  %v491_v27 = vld [vmem:[%s1778_s3 + $0x30] sm:$0xff]  ;;  %v494_v28 = vld [vmem:[%s1778_s3 + $0x48] sm:$0xff]  ;;  %v489_v29 = vld [vmem:[%s1778_s3 + $0x20] sm:$0xff] }
  0x90   : > { %v492_v30 = vld [vmem:[%s1778_s3 + $0x38] sm:$0xff] }
  0x91   : > { %v342_v13 = vpop.permute.xlu1 %341  ;;  %v340_v14 = vpop.permute.xlu0 %339 }
  0x95   : > { %v346_v17 = vpop.permute.xlu1 %345  ;;  %v344_v18 = vpop.permute.xlu0 %343 }
  0x96   : > { %v351_v33 = vsel %vm347_vm2, %v346_v17, %v342_v13  ;;  %v350_v34 = vsel %vm347_vm2, %v344_v18, %v340_v14  ;;  %v349_v45 = vsel %vm347_vm2, %v342_v13, %v346_v17  ;;  %v348_v46 = vsel %vm347_vm2, %v340_v14, %v344_v18  ;;  %v499_v17 = vld [vmem:[%s1778_s3 + $0x70] sm:$0xff]  ;;  %v497_v18 = vld [vmem:[%s1778_s3 + $0x60] sm:$0xff] }
  0x97   : > { %v1207_v14 = vmov 0  }
  0x98   : > { %678 = vmatprep.mubr.bf16.mxu0 %v1207_v14  ;;  %1181 = vset.pattern.permute.xlu1 %v1207_v14 }
  0x99   : > { %v355_v21 = vpop.permute.xlu1 %354  ;;  %v353_v22 = vpop.permute.xlu0 %352  ;;  %1180 = vset.pattern.permute.xlu0 %v1207_v14  ;;  %859 = vmatprep.mubr.bf16.mxu1 %v1207_v14 }
  0x9d   : > { %v359_v31 = vpop.permute.xlu1 %358  ;;  %v357_v32 = vpop.permute.xlu0 %356 }
  0x9e   : > { %v362_v35 = vsel %vm360_vm3, %v355_v21, %v359_v31  ;;  %v361_v36 = vsel %vm360_vm3, %v353_v22, %v357_v32  ;;  %v364_v37 = vsel %vm360_vm3, %v359_v31, %v355_v21  ;;  %v363_v39 = vsel %vm360_vm3, %v357_v32, %v353_v22  ;;  %v493_v21 = vld [vmem:[%s1778_s3 + $0x40] sm:$0xff]  ;;  %v496_v22 = vld [vmem:[%s1778_s3 + $0x58] sm:$0xff]  ;;  %v487_v31 = vld [vmem:[%s1778_s3 + $0x10] sm:$0xff] }
  0x9f   : > { %v371_v38 = vsel %vm1323_vm6, %v351_v33, %v362_v35  ;;  %v369_v40 = vsel %vm1323_vm6, %v350_v34, %v361_v36  ;;  %v372_v49 = vsel %vm1327_vm7, %v349_v45, %v364_v37  ;;  %v370_v50 = vsel %vm1327_vm7, %v348_v46, %v363_v39  ;;  %v490_v32 = vld [vmem:[%s1778_s3 + $0x28] sm:$0xff]  ;;  %v485_v33 = vld [vmem:[%s1778_s3] sm:$0xff]  ;;  %v488_v34 = vld [vmem:[%s1778_s3 + $0x18] sm:$0xff] }
  0xa0   : > { %v1367_v47 = vsub.f32 %v371_v38, %v337_v42  ;;  %v1369_v48 = vsub.f32 %v369_v40, %v335_v44  ;;  %v1387_v55 = vsub.f32 %v372_v49, %v338_v53  ;;  %v1389_v56 = vsub.f32 %v370_v50, %v336_v54  ;;  %v486_v35 = vld [vmem:[%s1778_s3 + $0x8] sm:$0xff]  ;;  %v809_v36 = vld [vmem:[%s1780_s5] sm:$0xff] }
  0xa1   : > { %v383_v57 = vadd.f32 %v371_v38, %v337_v42  ;;  %v381_v58 = vadd.f32 %v369_v40, %v335_v44  ;;  %v384_v61 = vadd.f32 %v372_v49, %v338_v53  ;;  %v382_v63 = vadd.f32 %v370_v50, %v336_v54 }
  0xa2   : > { %399 = vrot.lane.b32.xlu1 %v1367_v47, %s1205_s7  ;;  %397 = vrot.lane.b32.xlu0 %v1369_v48, %s1205_s7 }
  0xa3   : > { %v387_v62 = vmul.f32 0.125, %v383_v57  ;;  %v385_v4 = vmul.f32 0.125, %v381_v58  ;;  %v388_v7 = vmul.f32 0.125, %v384_v61  ;;  %v386_v8 = vmul.f32 0.125, %v382_v63 }
  0xa4   : > { %v396_v61 = vmul.f32 0.25, %v1387_v55  ;;  %v394_v63 = vmul.f32 0.25, %v1389_v56 }
  0xa5   : > { %v391_v9 = vadd.f32 %v387_v62, %v379_v59  ;;  %v389_v10 = vadd.f32 %v385_v4, %v377_v60  ;;  %v392_v11 = vadd.f32 %v388_v7, %v380_v5  ;;  %v390_v13 = vadd.f32 %v386_v8, %v378_v6 }
  0xa6   : > { %403 = vrot.lane.b32.xlu1 %v1387_v55, %s1205_s7  ;;  %401 = vrot.lane.b32.xlu0 %v1389_v56, %s1205_s7  ;;  %v395_v62 = vmul.f32 0.25, %v1367_v47  ;;  %v393_v4 = vmul.f32 0.25, %v1369_v48 }
  0xaa   : > { %412 = vrot.lane.b32.xlu1 %v1367_v47, %s1206_s8  ;;  %410 = vrot.lane.b32.xlu0 %v1369_v48, %s1206_s8 }
  0xae   : > { %416 = vrot.lane.b32.xlu1 %v1387_v55, %s1206_s8  ;;  %414 = vrot.lane.b32.xlu0 %v1389_v56, %s1206_s8 }
  0xb2   : > { %437 = vrot.lane.b32.xlu1 %v391_v9, %s1206_s8  ;;  %435 = vrot.lane.b32.xlu0 %v389_v10, %s1206_s8 }
  0xb6   : > { %441 = vrot.lane.b32.xlu1 %v392_v11, %s1206_s8  ;;  %439 = vrot.lane.b32.xlu0 %v390_v13, %s1206_s8 }
  0xba   : > { %449 = vrot.lane.b32.xlu1 %v391_v9, %s1205_s7  ;;  %447 = vrot.lane.b32.xlu0 %v389_v10, %s1205_s7 }
  0xbe   : > { %453 = vrot.lane.b32.xlu1 %v392_v11, %s1205_s7  ;;  %451 = vrot.lane.b32.xlu0 %v390_v13, %s1205_s7 }
  0xc2   : > { %578 = vperm.xlu1 %1181, %v500_v16   ;;  %573 = vperm.xlu0 %1180, %v499_v17  }
  0xc6   : > { %563 = vperm.xlu1 %1181, %v497_v18   ;;  %568 = vperm.xlu0 %1180, %v498_v20  }
  0xca   : > { %553 = vperm.xlu1 %1181, %v495_v19   ;;  %558 = vperm.xlu0 %1180, %v496_v22  }
  0xce   : > { %543 = vperm.xlu1 %1181, %v493_v21   ;;  %548 = vperm.xlu0 %1180, %v494_v28  }
  0xd2   : > { %533 = vperm.xlu1 %1181, %v491_v27   ;;  %538 = vperm.xlu0 %1180, %v492_v30  }
  0xd6   : > { %523 = vperm.xlu1 %1181, %v489_v29   ;;  %528 = vperm.xlu0 %1180, %v490_v32  }
  0xda   : > { %513 = vperm.xlu1 %1181, %v487_v31   ;;  %518 = vperm.xlu0 %1180, %v488_v34  }
  0xde   : > { %503 = vperm.xlu1 %1181, %v485_v33   ;;  %508 = vperm.xlu0 %1180, %v486_v35  }
  0xe2   : > { %813 = vperm.xlu1 %1181, %v809_v36  }
 0x114   : > { %v400_v37 = vpop.permute.xlu1 %399  ;;  %v398_v38 = vpop.permute.xlu0 %397 }
 0x118   : > { %v404_v39 = vpop.permute.xlu1 %403  ;;  %v402_v40 = vpop.permute.xlu0 %401 }
 0x119   : > { %v407_v43 = vsel %vm405_vm8, %v400_v37, %v404_v39  ;;  %v409_v44 = vsel %vm405_vm8, %v404_v39, %v400_v37  ;;  %v406_v45 = vsel %vm405_vm8, %v398_v38, %v402_v40  ;;  %v408_v46 = vsel %vm405_vm8, %v402_v40, %v398_v38 }
 0x11a   : > { %v464_v40 = vpack.c.bf16 %v1273_v2, %v1263_v0  ;;  %v1184_v2 = vld [vmem:[%s1777_s2 + $0x10] sm:$0xff]  }
 0x11c   : > { %v413_v41 = vpop.permute.xlu1 %412  ;;  %v411_v42 = vpop.permute.xlu0 %410 }
 0x120   : > { %v417_v49 = vpop.permute.xlu1 %416  ;;  %v415_v50 = vpop.permute.xlu0 %414 }
 0x121   : > { %v420_v51 = vsel %vm418_vm9, %v413_v41, %v417_v49  ;;  %v422_v52 = vsel %vm418_vm9, %v417_v49, %v413_v41  ;;  %v419_v53 = vsel %vm418_vm9, %v411_v42, %v415_v50  ;;  %v421_v54 = vsel %vm418_vm9, %v415_v50, %v411_v42  ;;  %v1182_v42 = vld [vmem:[%s1777_s2] sm:$0xff]   ;;  %v1189_v49 = vld [vmem:[%s1777_s2 + $0x38] sm:$0xff]  }
 0x122   : > { %v425_v57 = vadd.f32 %v420_v51, %v409_v44  ;;  %v426_v58 = vadd.f32 %v422_v52, %v407_v43  ;;  %v423_v59 = vadd.f32 %v419_v53, %v408_v46  ;;  %v424_v60 = vadd.f32 %v421_v54, %v406_v45  ;;  %v1183_v43 = vld [vmem:[%s1777_s2 + $0x8] sm:$0xff]   ;;  %v1186_v44 = vld [vmem:[%s1777_s2 + $0x20] sm:$0xff]   ;;  %v1188_v46 = vld [vmem:[%s1777_s2 + $0x30] sm:$0xff]  }
 0x123   : > { %v463_v41 = vpack.c.bf16 %v1276_v3, %v1266_v1  ;;  %v1185_v3 = vld [vmem:[%s1777_s2 + $0x18] sm:$0xff]   ;;  %v1187_v45 = vld [vmem:[%s1777_s2 + $0x28] sm:$0xff]  }
 0x124   : > { %v429_v5 = vmul.f32 0.125, %v425_v57  ;;  %v430_v6 = vmul.f32 0.125, %v426_v58  ;;  %v427_v7 = vmul.f32 0.125, %v423_v59  ;;  %v428_v8 = vmul.f32 0.125, %v424_v60  ;;  %v438_v9 = vpop.permute.xlu1 %437  ;;  %v436_v10 = vpop.permute.xlu0 %435 }
 0x125   : > { %v891_v58 = vrot.slane %v1266_v1, 3 }
 0x126   : > { %v433_v11 = vadd.f32 %v429_v5, %v395_v62  ;;  %v434_v13 = vadd.f32 %v430_v6, %v396_v61  ;;  %v431_v16 = vadd.f32 %v427_v7, %v393_v4  ;;  %v432_v17 = vadd.f32 %v428_v8, %v394_v63 }
 0x127   : > { %895 = vrot.lane.b32.xlu0 %v891_v58, %s1201_s27 }
 0x128   : > { %v442_v18 = vpop.permute.xlu1 %441  ;;  %v440_v19 = vpop.permute.xlu0 %439  ;;  %v466_v20 = vpack.c.bf16 %v434_v13, %v432_v17  ;;  %v465_v55 = vpack.c.bf16 %v433_v11, %v431_v16 }
 0x129   : > { %v444_v56 = vsel %vm418_vm9, %v438_v9, %v442_v18  ;;  %v446_v48 = vsel %vm418_vm9, %v442_v18, %v438_v9  ;;  %v443_v22 = vsel %vm418_vm9, %v436_v10, %v440_v19  ;;  %v445_v27 = vsel %vm418_vm9, %v440_v19, %v436_v10 }
 0x12b   : > { %901 = vrot.lane.b32.xlu0 %v891_v58, %s1202_s28 }
 0x12c   : > { %v450_v21 = vpop.permute.xlu1 %449  ;;  %v448_v47 = vpop.permute.xlu0 %447 }
 0x12f   : > { %909 = vrot.lane.b32.xlu0 %v891_v58, %s1203_s29 }
 0x130   : > { %v454_v28 = vpop.permute.xlu1 %453  ;;  %v452_v29 = vpop.permute.xlu0 %451 }
 0x131   : > { %v456_v30 = vsel %vm405_vm8, %v450_v21, %v454_v28  ;;  %v458_v31 = vsel %vm405_vm8, %v454_v28, %v450_v21  ;;  %v455_v32 = vsel %vm405_vm8, %v448_v47, %v452_v29  ;;  %v457_v33 = vsel %vm405_vm8, %v452_v29, %v448_v47 }
 0x132   : > { %v461_v34 = vsub.f32 %v444_v56, %v458_v31  ;;  %v459_v35 = vsub.f32 %v443_v22, %v457_v33  ;;  %v460_v36 = vsub.f32 %v445_v27, %v455_v32  ;;  %v462_v37 = vsub.f32 %v446_v48, %v456_v30 }
 0x133   : > { %915 = vrot.lane.b32.xlu0 %v891_v58, %s1204_s30 }
 0x134   : > { %v468_v38 = vpack.c.bf16 %v462_v37, %v460_v36  ;;  %v467_v39 = vpack.c.bf16 %v461_v34, %v459_v35 }
 0x136   : > { %656 = vmatprep.subr.bf16.mxu0 %v468_v38 }
 0x137   : > { %657 = vmatpush1.bf16.msra.mxu0 %v467_v39 }
 0x138   : > { %658 = vmatprep.subr.bf16.mxu0 %v466_v20 }
 0x13b   : > { %659 = vmatpush1.bf16.msra.mxu0 %v465_v55 }
 0x13c   : > { %660 = vmatprep.subr.bf16.mxu0 %v464_v40 }
 0x13d   : > { %v1551_v50 = vpop.permute.xlu1 %578  ;;  %v1553_v51 = vpop.permute.xlu0 %573 }
 0x13f   : > { %661 = vmatpush1.bf16.msra.mxu0 %v463_v41 }
 0x141   : > { %v1555_v52 = vpop.permute.xlu1 %563  ;;  %v1557_v53 = vpop.permute.xlu0 %568 }
 0x142   : > { %1148 = vmatmul.mubr.msk.bf16.vlgmr.msra.gmra.mxu0 %vm621_vm10, %v1182_v42 }
 0x143   : > { %688 = vmatprep.mubr.bf16.mxu0 %v1207_v14 }
 0x145   : > { %v1559_v54 = vpop.permute.xlu1 %553  ;;  %v1561_v57 = vpop.permute.xlu0 %558 }
 0x149   : > { %v1567_v59 = vpop.permute.xlu1 %543  ;;  %v1569_v60 = vpop.permute.xlu0 %548 }
 0x14a   : > { %1149 = vmatmul.mubr.msk.bf16.gmra.mxu0 %vm621_vm10, %v1183_v43 }
 0x14b   : > { %698 = vmatprep.mubr.bf16.mxu0 %v1207_v14 }
 0x14d   : > { %v1573_v61 = vpop.permute.xlu1 %533  ;;  %v1577_v62 = vpop.permute.xlu0 %538 }
 0x151   : > { %v1581_v63 = vpop.permute.xlu1 %523  ;;  %v1583_v4 = vpop.permute.xlu0 %528 }
 0x152   : > { %1150 = vmatmul.mubr.msk.bf16.gmra.mxu0 %vm621_vm10, %v1184_v2 }
 0x153   : > { %708 = vmatprep.mubr.bf16.mxu0 %v1207_v14 }
 0x155   : > { %v514_v5 = vpop.permute.xlu1 %513  ;;  %v519_v6 = vpop.permute.xlu0 %518 }
 0x159   : > { %v504_v7 = vpop.permute.xlu1 %503  ;;  %v509_v10 = vpop.permute.xlu0 %508 }
 0x15a   : > { %1151 = vmatmul.mubr.msk.bf16.gmra.mxu0 %vm621_vm10, %v1185_v3 }
 0x15b   : > { %718 = vmatprep.mubr.bf16.mxu0 %v1207_v14 }
 0x162   : > { %1152 = vmatmul.mubr.msk.bf16.gmra.mxu0 %vm621_vm10, %v1186_v44 }
 0x163   : > { %728 = vmatprep.mubr.bf16.mxu0 %v1207_v14 }
 0x16a   : > { %1153 = vmatmul.mubr.msk.bf16.gmra.mxu0 %vm621_vm10, %v1187_v45 }
 0x16b   : > { %738 = vmatprep.mubr.bf16.mxu0 %v1207_v14 }
 0x172   : > { %1154 = vmatmul.mubr.msk.bf16.gmra.mxu0 %vm621_vm10, %v1188_v46 }
 0x173   : > { %748 = vmatprep.mubr.bf16.mxu0 %v1207_v14  ;;  %v892_v14 = vrot.slane %v1263_v0, 3 }
 0x175   : > { %897 = vrot.lane.b32.xlu1 %v892_v14, %s1201_s27 }
 0x179   : > { %903 = vrot.lane.b32.xlu1 %v892_v14, %s1202_s28 }
 0x17a   : > { %1155 = vmatmul.mubr.msk.bf16.gmra.mxu0 %vm621_vm10, %v1189_v49 }
 0x17d   : > { %911 = vrot.lane.b32.xlu1 %v892_v14, %s1203_s29 }
 0x181   : > { %917 = vrot.lane.b32.xlu1 %v892_v14, %s1204_s30 }
 0x202   : > { %v680_v8 = vpop.f32.mrf.mxu0 }
 0x203   : > { %v681_v11 = vadd.f32 %v680_v8, %v504_v7 }
 0x204   : > { %v682_v9 = vpop.f32.mrf.mxu0 }
 0x205   : > { %v683_v16 = vadd.f32 %v682_v9, %v504_v7  ;;  %v759_v19 = vmax.f32 %v681_v11, 0.0 }
 0x206   : > { %v684_v13 = vpop.f32.mrf.mxu0 }
 0x207   : > { %v685_v17 = vadd.f32 %v684_v13, %v509_v10  ;;  %v760_v47 = vmax.f32 %v683_v16, 0.0 }
 0x208   : > { %v686_v18 = vpop.f32.mrf.mxu0 }
 0x209   : > { %v761_v20 = vmax.f32 %v685_v17, 0.0  ;;  %v687_v55 = vadd.f32 %v686_v18, %v509_v10 }
 0x20a   : > { %v690_v21 = vpop.f32.mrf.mxu0 }
 0x20b   : > { %v762_v56 = vmax.f32 %v687_v55, 0.0  ;;  %v1585_v48 = vpack.c.bf16 %v761_v20, %v759_v19  ;;  %v691_v28 = vadd.f32 %v690_v21, %v514_v5 }
 0x20c   : > { %v692_v22 = vpop.f32.mrf.mxu0 }
 0x20d   : > { %v1587_v27 = vpack.c.bf16 %v762_v56, %v760_v47  ;;  %v693_v30 = vadd.f32 %v692_v22, %v514_v5  ;;  %v763_v33 = vmax.f32 %v691_v28, 0.0 }
 0x20e   : > { %v694_v29 = vpop.f32.mrf.mxu0 }
 0x20f   : > { %v695_v31 = vadd.f32 %v694_v29, %v519_v6  ;;  %v764_v37 = vmax.f32 %v693_v30, 0.0 }
 0x210   : > { %v696_v32 = vpop.f32.mrf.mxu0 }
 0x211   : > { %v765_v34 = vmax.f32 %v695_v31, 0.0  ;;  %v697_v35 = vadd.f32 %v696_v32, %v519_v6 }
 0x212   : > { %v1589_v36 = vpop.f32.mrf.mxu0 }
 0x213   : > { %v1591_v38 = vpack.c.bf16 %v765_v34, %v763_v33  ;;  %v766_v39 = vmax.f32 %v697_v35, 0.0 }
 0x214   : > { %v1593_v40 = vpop.f32.mrf.mxu0 }
 0x215   : > { %v1595_v41 = vpack.c.bf16 %v766_v39, %v764_v37 }
 0x216   : > { %v1597_v42 = vpop.f32.mrf.mxu0 }
 0x218   : > { %v1599_v43 = vpop.f32.mrf.mxu0 }
 0x21a   : > { %v1601_v2 = vpop.f32.mrf.mxu0 }
 0x21c   : > { %v712_v3 = vpop.f32.mrf.mxu0 }
 0x21e   : > { %v714_v44 = vpop.f32.mrf.mxu0 }
 0x220   : > { %v716_v45 = vpop.f32.mrf.mxu0 }
 0x222   : > { %v720_v46 = vpop.f32.mrf.mxu0 }
 0x224   : > { %v722_v49 = vpop.f32.mrf.mxu0 }
 0x226   : > { %v724_v14 = vpop.f32.mrf.mxu0 }
 0x228   : > { %v726_v58 = vpop.f32.mrf.mxu0 }
 0x22a   : > { %v730_v5 = vpop.f32.mrf.mxu0 }
 0x22c   : > { %v732_v6 = vpop.f32.mrf.mxu0 }
 0x22d   : > { %v733_v37 = vadd.f32 %v732_v6, %v1559_v54  ;;  %v725_v6 = vadd.f32 %v724_v14, %v1569_v60 }
 0x22e   : > { %v734_v7 = vpop.f32.mrf.mxu0 }
 0x230   : > { %v736_v8 = vpop.f32.mrf.mxu0 }
 0x231   : > { %v737_v30 = vadd.f32 %v736_v8, %v1561_v57  ;;  %v731_v8 = vadd.f32 %v730_v5, %v1559_v54  ;;  %v713_v54 = vadd.f32 %v712_v3, %v1573_v61 }
 0x232   : > { %v740_v9 = vpop.f32.mrf.mxu0 }
 0x233   : > { %v741_v34 = vadd.f32 %v740_v9, %v1555_v52  ;;  %v780_v9 = vmax.f32 %v733_v37, 0.0  ;;  %v772_v3 = vmax.f32 %v713_v54, 0.0 }
 0x234   : > { %v742_v10 = vpop.f32.mrf.mxu0 }
 0x235   : > { %v743_v56 = vadd.f32 %v742_v10, %v1555_v52  ;;  %v723_v52 = vadd.f32 %v722_v49, %v1567_v59  ;;  %v715_v49 = vadd.f32 %v714_v44, %v1577_v62 }
 0x236   : > { %v744_v11 = vpop.f32.mrf.mxu0 }
 0x237   : > { %v745_v28 = vadd.f32 %v744_v11, %v1557_v53  ;;  %v784_v39 = vmax.f32 %v743_v56, 0.0  ;;  %v776_v5 = vmax.f32 %v723_v52, 0.0  ;;  %v773_v44 = vmax.f32 %v715_v49, 0.0 }
 0x238   : > { %v746_v13 = vpop.f32.mrf.mxu0 }
 0x239   : > { %v747_v19 = vadd.f32 %v746_v13, %v1557_v53  ;;  %v735_v13 = vadd.f32 %v734_v7, %v1561_v57  ;;  %v785_v10 = vmax.f32 %v745_v28, 0.0  ;;  %v782_v53 = vmax.f32 %v737_v30, 0.0 }
 0x23a   : > { %v750_v16 = vpop.f32.mrf.mxu0  ;;  %v717_v57 = vadd.f32 %v716_v45, %v1577_v62  ;;  %v711_v45 = vadd.f32 %v1601_v2, %v1573_v61  ;;  %v705_v62 = vadd.f32 %v1597_v42, %v1583_v4  ;;  %v896_v42 = vpop.permute.xlu0 %895 }
 0x23b   : > { %v751_v21 = vadd.f32 %v750_v16, %v1553_v51  ;;  %v786_v31 = vmax.f32 %v747_v19, 0.0 }
 0x23c   : > { %v752_v17 = vpop.f32.mrf.mxu0  ;;  %v774_v14 = vmax.f32 %v717_v57, 0.0  ;;  %v771_v30 = vmax.f32 %v711_v45, 0.0  ;;  %v769_v2 = vmax.f32 %v705_v62, 0.0 }
 0x23d   : > { %v753_v20 = vadd.f32 %v752_v17, %v1553_v51  ;;  %v787_v35 = vmax.f32 %v751_v21, 0.0  ;;  %v806_v11 = vpack.c.bf16 %v786_v31, %v784_v39  ;;  %v783_v17 = vmax.f32 %v741_v34, 0.0 }
 0x23e   : > { %v754_v18 = vpop.f32.mrf.mxu0  ;;  %v777_v21 = vmax.f32 %v725_v6, 0.0  ;;  %v799_v31 = vpack.c.bf16 %v773_v44, %v771_v30  ;;  %v902_v34 = vpop.permute.xlu0 %901  ;;  %v1208_v39 = vmov 0.0  }
 0x23f   : > { %v755_v55 = vadd.f32 %v754_v18, %v1551_v50  ;;  %v788_v32 = vmax.f32 %v753_v20, 0.0  ;;  %v781_v18 = vmax.f32 %v735_v13, 0.0  ;;  %v805_v19 = vpack.c.bf16 %v785_v10, %v783_v17 }
 0x240   : > { %v756_v47 = vpop.f32.mrf.mxu0  ;;  %v804_v20 = vpack.c.bf16 %v782_v53, %v780_v9 }
 0x241   : > { %v757_v22 = vadd.f32 %v756_v47, %v1551_v50  ;;  %v789_v29 = vmax.f32 %v755_v55, 0.0  ;;  %v727_v50 = vadd.f32 %v726_v58, %v1569_v60  ;;  %v721_v58 = vadd.f32 %v720_v46, %v1567_v59 }
 0x242   : > { %v779_v55 = vmax.f32 %v731_v8, 0.0  ;;  %v707_v60 = vadd.f32 %v1599_v43, %v1583_v4  ;;  %v703_v59 = vadd.f32 %v1593_v40, %v1581_v63  ;;  %v701_v43 = vadd.f32 %v1589_v36, %v1581_v63  ;;  %v1190_v63 = vld [vmem:[%s1779_s4] sm:$0xff]   ;;  %v814_v4 = vpop.permute.xlu1 %813  ;;  %v910_v37 = vpop.permute.xlu0 %909 }
 0x243   : > { %v790_v33 = vmax.f32 %v757_v22, 0.0  ;;  %v807_v16 = vpack.c.bf16 %v789_v29, %v787_v35  ;;  %v778_v7 = vmax.f32 %v727_v50, 0.0  ;;  %v775_v22 = vmax.f32 %v721_v58, 0.0 }
 0x244   : > { %v803_v47 = vpack.c.bf16 %v781_v18, %v779_v55  ;;  %v770_v28 = vmax.f32 %v707_v60, 0.0  ;;  %v800_v29 = vpack.c.bf16 %v774_v14, %v772_v3  ;;  %v768_v61 = vmax.f32 %v703_v59, 0.0 }
 0x245   : > { %v808_v51 = vpack.c.bf16 %v790_v33, %v788_v32  ;;  %v802_v56 = vpack.c.bf16 %v778_v7, %v776_v5  ;;  %v801_v46 = vpack.c.bf16 %v777_v21, %v775_v22  ;;  %v767_v32 = vmax.f32 %v701_v43, 0.0 }
 0x246   : > { %v798_v40 = vpack.c.bf16 %v770_v28, %v768_v61  ;;  %v898_v36 = vpop.permute.xlu1 %897  ;;  %v916_v53 = vpop.permute.xlu0 %915 }
 0x247   : > { %827 = vmatprep.subr.bf16.mxu1 %v808_v51  ;;  %v797_v33 = vpack.c.bf16 %v769_v2, %v767_v32  ;;  %v899_v17 = vsel %vm313_vm0, %v896_v42, %v898_v36  ;;  %v900_v57 = vsel %vm313_vm0, %v898_v36, %v896_v42 }
 0x248   : > { %828 = vmatpush1.bf16.msra.mxu1 %v807_v16 }
 0x249   : > { %829 = vmatprep.subr.bf16.mxu1 %v806_v11 }
 0x24c   : > { %830 = vmatpush1.bf16.msra.mxu1 %v805_v19 }
 0x24d   : > { %831 = vmatprep.subr.bf16.mxu1 %v804_v20 }
 0x250   : > { %832 = vmatpush1.bf16.msra.mxu1 %v803_v47 }
 0x251   : > { %833 = vmatprep.subr.bf16.mxu1 %v802_v56 }
 0x254   : > { %834 = vmatpush1.bf16.msra.mxu1 %v801_v46 }
 0x255   : > { %835 = vmatprep.subr.bf16.mxu1 %v800_v29 }
 0x258   : > { %836 = vmatpush1.bf16.msra.mxu1 %v799_v31 }
 0x259   : > { %837 = vmatprep.subr.bf16.mxu1 %v798_v40 }
 0x25c   : > { %838 = vmatpush1.bf16.msra.mxu1 %v797_v33 }
 0x25d   : > { %839 = vmatprep.subr.bf16.mxu1 %v1595_v41  ;;  %v904_v41 = vpop.permute.xlu1 %903 }
 0x25e   : > { %v906_v52 = vsel %vm326_vm1, %v904_v41, %v902_v34  ;;  %v905_v7 = vsel %vm326_vm1, %v902_v34, %v904_v41 }
 0x25f   : > { %v907_v5 = vsel %vm1315_vm4, %v899_v17, %v906_v52  ;;  %v908_v60 = vsel %vm1319_vm5, %v900_v57, %v905_v7 }
 0x260   : > { %840 = vmatpush1.bf16.msra.mxu1 %v1591_v38  ;;  %v870_v38 = vld [vmem:[%s263_s25] sm:$0x3] }
 0x261   : > { %841 = vmatprep.subr.bf16.mxu1 %v1587_v27  ;;  %v1644_v27 = vshrl.u32 %v274_v12, 7  ;;  %vm871_vm11 = vcmp.lt.f32.partialorder %v870_v38, 0.5  ;;  %v912_v35 = vpop.permute.xlu1 %911 }
 0x262   : > { %v1157_v51 = vsel %vm871_vm11, 1.0, %v1208_v39  ;;  %v914_v18 = vsel %vm347_vm2, %v912_v35, %v910_v37  ;;  %v913_v55 = vsel %vm347_vm2, %v910_v37, %v912_v35 }
 0x263   : > { %v881_v13 = vsub.s32 1, %v1644_v27 }
 0x264   : > { %842 = vmatpush1.bf16.msra.mxu1 %v1585_v48  ;;  %v877_v48 = vsub.s32 0, %v1644_v27 }
 0x265   : > { %v918_v16 = vpop.permute.xlu1 %917  ;;  %v1651_v8 = vrot.slane %v1157_v51, %v881_v13 }
 0x266   : > { %v1649_v10 = vrot.slane %v1157_v51, %v877_v48  ;;  %v919_v19 = vsel %vm360_vm3, %v916_v53, %v918_v16  ;;  %v920_v54 = vsel %vm360_vm3, %v918_v16, %v916_v53 }
 0x267   : > { %860 = vmatmul.mubr.bf16.vlgmr.msra.gmra.mxu1 %v1190_v63  ;;  %v921_v49 = vsel %vm1323_vm6, %v914_v18, %v919_v19  ;;  %v922_v14 = vsel %vm1327_vm7, %v913_v55, %v920_v54 }
 0x268   : > { %v923_v45 = vmax.f32 %v907_v5, %v921_v49  ;;  %v924_v22 = vmax.f32 %v908_v60, %v922_v14 }
 0x26a   : > { %v927_v59 = vrot.slane %v923_v45, 5  ;;  %v928_v3 = vrot.slane %v924_v22, 5 }
 0x26c   : > { %v1693_v62 = vmax.f32 %v1266_v1, %v927_v59  ;;  %v1697_v44 = vmax.f32 %v1263_v0, %v928_v3 }
 0x26e   : > { %v935_v46 = vrot.slane %v1693_v62, 3  ;;  %v936_v28 = vrot.slane %v1697_v44, 3 }
 0x327   : > { %v861_v50 = vpop.f32.mrf.mxu1 }
 0x328   : > { %v862_v11 = vadd.f32 %v861_v50, %v814_v4 }
 0x329   : > { %v863_v12 = vpop.f32.mrf.mxu1 }
 0x32a   : > { %v885_v9 = vmul.f32 %v1649_v10, %v862_v11  ;;  %v864_v6 = vadd.f32 %v863_v12, %v814_v4 }
 0x32c   : > { %v1667_v20 = vadd.f32 %v885_v9, %v1266_v1  ;;  %v886_v58 = vmul.f32 %v1651_v8, %v864_v6 }
 0x32e   : > { %v1679_v21 = vadd.f32 %v886_v58, %v1263_v0  ;;  %v969_v47 = vrot.slane %v1667_v20, 3 }
 0x330   : > { %973 = vrot.lane.b32.xlu0 %v969_v47, %s1201_s27  ;;  %v970_v56 = vrot.slane %v1679_v21, 3 }
 0x332   : > { %975 = vrot.lane.b32.xlu1 %v970_v56, %s1201_s27 }
 0x334   : > { %979 = vrot.lane.b32.xlu0 %v969_v47, %s1202_s28 }
 0x336   : > { %981 = vrot.lane.b32.xlu1 %v970_v56, %s1202_s28 }
 0x338   : > { %987 = vrot.lane.b32.xlu0 %v969_v47, %s1203_s29 }
 0x33a   : > { %989 = vrot.lane.b32.xlu1 %v970_v56, %s1203_s29 }
 0x33c   : > { %993 = vrot.lane.b32.xlu0 %v969_v47, %s1204_s30 }
 0x33e   : > { %995 = vrot.lane.b32.xlu1 %v970_v56, %s1204_s30 }
 0x340   : > { %939 = vrot.lane.b32.xlu0 %v935_v46, %s1205_s7 }
 0x342   : > { %941 = vrot.lane.b32.xlu1 %v936_v28, %s1205_s7 }
 0x344   : > { %945 = vrot.lane.b32.xlu0 %v935_v46, %s1206_s8 }
 0x346   : > { %947 = vrot.lane.b32.xlu1 %v936_v28, %s1206_s8 }
 0x3a2   : > { %v974_v1 = vpop.permute.xlu0 %973 }
 0x3a4   : > { %v976_v29 = vpop.permute.xlu1 %975 }
 0x3a5   : > { %v977_v40 = vsel %vm313_vm0, %v974_v1, %v976_v29  ;;  %v978_v32 = vsel %vm313_vm0, %v976_v29, %v974_v1 }
 0x3a6   : > { %v980_v0 = vpop.permute.xlu0 %979 }
 0x3a8   : > { %v982_v43 = vpop.permute.xlu1 %981 }
 0x3a9   : > { %v983_v2 = vsel %vm326_vm1, %v980_v0, %v982_v43  ;;  %v984_v31 = vsel %vm326_vm1, %v982_v43, %v980_v0  ;;  %v1049_v0 = vsub.s32 3, %v1644_v27  ;;  %v865_v43 = vpop.f32.mrf.mxu1 }
 0x3aa   : > { %v988_v30 = vpop.permute.xlu0 %987  ;;  %v985_v34 = vsel %vm1315_vm4, %v977_v40, %v984_v31  ;;  %v986_v38 = vsel %vm1319_vm5, %v978_v32, %v983_v2 }
 0x3ac   : > { %v990_v61 = vpop.permute.xlu1 %989 }
 0x3ad   : > { %v991_v4 = vsel %vm347_vm2, %v988_v30, %v990_v61  ;;  %v992_v36 = vsel %vm347_vm2, %v990_v61, %v988_v30 }
 0x3ae   : > { %v994_v33 = vpop.permute.xlu0 %993 }
 0x3b0   : > { %v996_v63 = vpop.permute.xlu1 %995 }
 0x3b1   : > { %v997_v42 = vsel %vm360_vm3, %v994_v33, %v996_v63  ;;  %v998_v41 = vsel %vm360_vm3, %v996_v63, %v994_v33  ;;  %v1191_v63 = vld [vmem:[%s1260_s26 + $0x10] sm:$0xff] }
 0x3b2   : > { %v999_v35 = vsel %vm1323_vm6, %v992_v36, %v997_v42  ;;  %v1000_v37 = vsel %vm1327_vm7, %v991_v4, %v998_v41  ;;  %v940_v26 = vpop.permute.xlu0 %939  ;;  %v1192_v36 = vld [vmem:[%s1260_s26 + $0x18] sm:$0xff] }
 0x3b3   : > { %v1001_v48 = vmax.f32 %v985_v34, %v999_v35  ;;  %v1002_v51 = vmax.f32 %v986_v38, %v1000_v37 }
 0x3b4   : > { %v942_v25 = vpop.permute.xlu1 %941 }
 0x3b5   : > { %v1005_v13 = vrot.slane %v1001_v48, 5  ;;  %v1006_v16 = vrot.slane %v1002_v51, 5  ;;  %v943_v52 = vsel %vm405_vm8, %v940_v26, %v942_v25  ;;  %v944_v9 = vsel %vm405_vm8, %v942_v25, %v940_v26 }
 0x3b6   : > { %v946_v17 = vpop.permute.xlu0 %945 }
 0x3b7   : > { %v1010_v50 = vmax.f32 %v1679_v21, %v1006_v16  ;;  %v1009_v53 = vmax.f32 %v1667_v20, %v1005_v13 }
 0x3b8   : > { %v948_v12 = vpop.permute.xlu1 %947 }
 0x3b9   : > { %v1014_v11 = vrot.slane %v1010_v50, 3  ;;  %v1013_v23 = vrot.slane %v1009_v53, 3  ;;  %v949_v6 = vsel %vm418_vm9, %v946_v17, %v948_v12  ;;  %v950_v18 = vsel %vm418_vm9, %v948_v12, %v946_v17 }
 0x3ba   : > { %v951_v19 = vmax.f32 %v944_v9, %v949_v6  ;;  %v952_v57 = vmax.f32 %v943_v52, %v950_v18 }
 0x3bb   : > { %1019 = vrot.lane.b32.xlu1 %v1014_v11, %s1205_s7  ;;  %1017 = vrot.lane.b32.xlu0 %v1013_v23, %s1205_s7  ;;  %s268_s7 = scalar_lea.vmem %s1781_s6, %s1162_s23 }
 0x3bc   : > { %v955_v55 = vrot.slane %v951_v19, 5  ;;  %v956_v54 = vrot.slane %v952_v57, 5 }
 0x3be   : > { %v959_v59 = vmax.f32 %v1693_v62, %v955_v55  ;;  %v960_v28 = vmax.f32 %v1697_v44, %v956_v54  ;;  %v867_v44 = vpop.f32.mrf.mxu1 }
 0x3bf   : > { %1025 = vrot.lane.b32.xlu1 %v1014_v11, %s1206_s8  ;;  %1023 = vrot.lane.b32.xlu0 %v1013_v23, %s1206_s8 }
 0x3c0   : > { %vm961_vm12 = vcmp.gt.f32.partialorder %v959_v59, 0.1  ;;  %vm962_vm15 = vcmp.gt.f32.partialorder %v960_v28, 0.1 }
 0x3c3   : > { %818 = vperm.xlu0 %1180, %v810_v24  }
 0x42d   : > { %v1020_v7 = vpop.permute.xlu1 %1019  ;;  %v1018_v58 = vpop.permute.xlu0 %1017 }
 0x42e   : > { %v1021_v47 = vsel %vm405_vm8, %v1018_v58, %v1020_v7  ;;  %v1022_v60 = vsel %vm405_vm8, %v1020_v7, %v1018_v58 }
 0x431   : > { %v1026_v5 = vpop.permute.xlu1 %1025  ;;  %v1024_v49 = vpop.permute.xlu0 %1023 }
 0x432   : > { %v1027_v14 = vsel %vm418_vm9, %v1024_v49, %v1026_v5  ;;  %v1028_v56 = vsel %vm418_vm9, %v1026_v5, %v1024_v49 }
 0x433   : > { %v1029_v45 = vmax.f32 %v1022_v60, %v1027_v14  ;;  %v1030_v22 = vmax.f32 %v1021_v47, %v1028_v56 }
 0x435   : > { %v1033_v3 = vrot.slane %v1029_v45, 5  ;;  %v1034_v46 = vrot.slane %v1030_v22, 5 }
 0x437   : > { %v1037_v1 = vmax.f32 %v1009_v53, %v1033_v3  ;;  %v1038_v29 = vmax.f32 %v1010_v50, %v1034_v46 }
 0x439   : > { %vm1039_vm13 = vcmp.gt.f32.partialorder %v1037_v1, 0.1  ;;  %vm1040_vm14 = vcmp.gt.f32.partialorder %v1038_v29, 0.1 }
 0x43a   : > { %vm1041_vm0 = vmand %vm961_vm12, %vm1039_vm13 }
 0x43b   : > { %vm1042_vm1 = vmand %vm962_vm15, %vm1040_vm14  ;;  %v1158_v15 = vsel %vm1041_vm0, 1.0, %v1208_v39 }
 0x43c   : > { %v1159_v62 = vsel %vm1042_vm1, 1.0, %v1208_v39  ;;  %v1050_v30 = vrot.slane %v1158_v15, %v1049_v0 }
 0x43d   : > { %v1054_v27 = vrot.slane %v1159_v62, %v1049_v0 }
 0x43e   : > { %v1055_v61 = vmul.f32 %v1050_v30, %v1667_v20  ;;  %v819_v2 = vpop.permute.xlu0 %818 }
 0x43f   : > { %v1056_v31 = vmul.f32 %v1054_v27, %v1679_v21  ;;  %v866_v40 = vadd.f32 %v865_v43, %v819_v2  ;;  %v868_v32 = vadd.f32 %v867_v44, %v819_v2 }
 0x440   : > { %1059 = vst [vmem:[%s268_s7] sm:$0xff] %v1055_v61 }
 0x441   : > { %1060 = vst [vmem:[%s268_s7 + $0x8] sm:$0xff] %v1056_v31  ;;  %v887_v39 = vmul.f32 %v1649_v10, %v866_v40  ;;  %v888_v33 = vmul.f32 %v1651_v8, %v868_v32 }
 0x443   : > { %v965_v4 = vadd.f32 %v1191_v63, %v887_v39  ;;  %v966_v42 = vadd.f32 %v1192_v36, %v888_v33 }
 0x445   : > { %v1057_v41 = vmul.f32 %v1050_v30, %v965_v4  ;;  %v1058_v34 = vmul.f32 %v1054_v27, %v966_v42 }
 0x447   : > { %1061 = vst [vmem:[%s268_s7 + $0x10] sm:$0xff] %v1057_v41  ;;  %1062 = vst [vmem:[%s268_s7 + $0x18] sm:$0xff] %v1058_v34 }
 0x448 PF: > { %s16_s21 = sadd.s32 1, %s1199_s21  }
 0x449   : > { %p13_p4 = scmp.ge.s32.totalorder %s16_s21, 4  }
 0x44b   :  { %15 = sbr.rel (!%p13_p4) target bundleno = 1 (0x1), region = 77 }

</bundles_post_ra>
